<compile_context>
chip_gen: v7x
topology: tpu7x:2x2x1
jax: 0.10.0
libtpu: 0.0.40
codegen_flags: <defaults>
</compile_context>

<pallas_src>
import functools

import jax
import jax.numpy as jnp
from jax import lax
from jax.experimental import pallas as pl
from jax.experimental.pallas import tpu as pltpu


# ---------------------------------------------------------------------------
# Fused kernel: 3x3 conv (as matmul over im2col patches) + bias + GroupNorm + ReLU
# One grid step == one image.
# ---------------------------------------------------------------------------
def _conv_gn_relu_kernel(p_ref, w_ref, a_ref, b_ref, gamma_ref, beta_ref,
                         o_ref, *, eps):
    """
    p_ref     : (K, S)      im2col patches, K = 9*C_in, S = H*W (spatial on lanes)
    w_ref     : (C_out, K)  conv weight, resident
    a_ref     : (C_out, C_out) group-averaging matrix (membership / (g*S)), resident
    b_ref     : (C_out, 1)  conv bias, resident
    gamma_ref : (C_out, 1)  GroupNorm weight, resident
    beta_ref  : (C_out, 1)  GroupNorm bias, resident
    o_ref     : (C_out, S)  output block (lane-dense along spatial)
    """
    # Conv: single MXU matmul, output channels on sublanes, spatial on lanes.
    z = jnp.dot(w_ref[...], p_ref[...], preferred_element_type=jnp.float32)
    z = z + b_ref[...]

    # GroupNorm statistics.  a_ref @ z sums each channel's group at every pixel
    # (pre-scaled by 1/(group_size*S)), then a lane reduction gives per-channel
    # group mean / E[x^2].  No reshapes, no integer division inside the kernel.
    grp_m1 = jnp.dot(a_ref[...], z, preferred_element_type=jnp.float32)
    grp_m2 = jnp.dot(a_ref[...], z * z, preferred_element_type=jnp.float32)
    mean_c = jnp.sum(grp_m1, axis=-1, keepdims=True)          # (C_out, 1)
    ex2_c = jnp.sum(grp_m2, axis=-1, keepdims=True)           # (C_out, 1)
    var_c = jnp.maximum(ex2_c - mean_c * mean_c, 0.0)
    inv_std = lax.rsqrt(var_c + eps)                           # EUP

    y = (z - mean_c) * inv_std * gamma_ref[...] + beta_ref[...]
    o_ref[...] = jnp.maximum(y, 0.0).astype(o_ref.dtype)


# ---------------------------------------------------------------------------
# CBRblock wrapper: Conv2d(3x3, stride=1, pad=1, bias) -> GroupNorm(8) -> ReLU
# ---------------------------------------------------------------------------
def cbr_block(x, weight, bias, gamma, beta, *, num_groups=8, eps=1e-5):
    N, cin, H, W = x.shape
    cout = weight.shape[0]
    assert cout % num_groups == 0
    S = H * W
    K = 9 * cin

    # --- wrapper-side data movement only (no transposes of the channel axis) ---
    xp = jnp.pad(x, ((0, 0), (0, 0), (1, 1), (1, 1)))
    # im2col, tap-major (dy, dx) then channel, matching the weight reshape below.
    patches = jnp.concatenate(
        [xp[:, :, dy:dy + H, dx:dx + W] for dy in range(3) for dx in range(3)],
        axis=1,
    ).reshape(N, K, S)

    wmat = jnp.transpose(weight, (0, 2, 3, 1)).reshape(cout, K).astype(jnp.float32)
    b_col = bias.reshape(cout, 1).astype(jnp.float32)
    g_col = gamma.reshape(cout, 1).astype(jnp.float32)
    t_col = beta.reshape(cout, 1).astype(jnp.float32)

    gsize = cout // num_groups
    ch = jnp.arange(cout)
    grp = ch // gsize
    a_mat = ((grp[:, None] == grp[None, :]).astype(jnp.float32)
             / float(gsize * S))                               # (C_out, C_out)

    kernel = functools.partial(_conv_gn_relu_kernel, eps=eps)

    flops = 2 * N * cout * K * S + 4 * N * cout * cout * S + 10 * N * cout * S
    bytes_accessed = 4 * (N * K * S + cout * K + cout * cout
                          + 3 * cout + N * cout * S)

    out = pl.pallas_call(
        kernel,
        out_shape=jax.ShapeDtypeStruct((N, cout, S), x.dtype),
        grid_spec=pltpu.PrefetchScalarGridSpec(
            num_scalar_prefetch=0,
            grid=(N,),
            in_specs=[
                pl.BlockSpec((None, K, S), lambda n: (n, 0, 0)),   # patches (per image)
                pl.BlockSpec((cout, K), lambda n: (0, 0)),         # weight (resident)
                pl.BlockSpec((cout, cout), lambda n: (0, 0)),      # group matrix (resident)
                pl.BlockSpec((cout, 1), lambda n: (0, 0)),         # bias (resident)
                pl.BlockSpec((cout, 1), lambda n: (0, 0)),         # gamma (resident)
                pl.BlockSpec((cout, 1), lambda n: (0, 0)),         # beta (resident)
            ],
            out_specs=pl.BlockSpec((None, cout, S), lambda n: (n, 0, 0)),
        ),
        compiler_params=pltpu.CompilerParams(
            dimension_semantics=("parallel",)),
        cost_estimate=pl.CostEstimate(
            flops=flops,
            transcendentals=N * cout,
            bytes_accessed=bytes_accessed),
    )(patches, wmat, a_mat, b_col, g_col, t_col)

    return out.reshape(N, cout, H, W)


# ---------------------------------------------------------------------------
# subpixelPool: strided-slice data movement (wrapper-side XLA)
# ---------------------------------------------------------------------------
def subpixel_pool(x):
    return jnp.concatenate(
        [x[:, :, ::2, ::2], x[:, :, ::2, 1::2],
         x[:, :, 1::2, ::2], x[:, :, 1::2, 1::2]], axis=1)


def polyencblock_forward(x, params):
    y = subpixel_pool(x)
    y1 = cbr_block(y, params["w1"], params["b1"], params["g1"], params["t1"])
    y2 = cbr_block(y1, params["w2"], params["b2"], params["g2"], params["t2"])
    return y2


# ---------------------------------------------------------------------------
# Pure-JAX reference (mirrors the PyTorch forward)
# ---------------------------------------------------------------------------
def _ref_cbr(x, weight, bias, gamma, beta, num_groups=8, eps=1e-5):
    y = lax.conv_general_dilated(
        x, weight, window_strides=(1, 1), padding="SAME",
        dimension_numbers=("NCHW", "OIHW", "NCHW"))
    y = y + bias.reshape(1, -1, 1, 1)
    N, C, H, W = y.shape
    yr = y.reshape(N, num_groups, C // num_groups, H, W)
    mean = yr.mean(axis=(2, 3, 4), keepdims=True)
    var = yr.var(axis=(2, 3, 4), keepdims=True)
    yn = ((yr - mean) * lax.rsqrt(var + eps)).reshape(N, C, H, W)
    yn = yn * gamma.reshape(1, -1, 1, 1) + beta.reshape(1, -1, 1, 1)
    return jnp.maximum(yn, 0.0)


def _ref_forward(x, params):
    y = subpixel_pool(x)
    y1 = _ref_cbr(y, params["w1"], params["b1"], params["g1"], params["t1"])
    return _ref_cbr(y1, params["w2"], params["b2"], params["g2"], params["t2"])


if __name__ == "__main__":
    key = jax.random.PRNGKey(0)
    ks = jax.random.split(key, 9)

    # Small shapes consistent with the module: in_ch=4, H=W=16 (even, required
    # by subpixelPool), out_ch=8 (GroupNorm(num_groups=8) needs out_ch % 8 == 0).
    N, in_ch, H, W = 2, 4, 16, 16
    out_ch = 8
    c1 = in_ch * 4

    x = jax.random.normal(ks[0], (N, in_ch, H, W), dtype=jnp.float32)
    params = {
        "w1": jax.random.normal(ks[1], (out_ch, c1, 3, 3), jnp.float32) * 0.1,
        "b1": jax.random.normal(ks[2], (out_ch,), jnp.float32) * 0.1,
        "g1": 1.0 + 0.1 * jax.random.normal(ks[3], (out_ch,), jnp.float32),
        "t1": 0.1 * jax.random.normal(ks[4], (out_ch,), jnp.float32),
        "w2": jax.random.normal(ks[5], (out_ch, out_ch, 3, 3), jnp.float32) * 0.1,
        "b2": jax.random.normal(ks[6], (out_ch,), jnp.float32) * 0.1,
        "g2": 1.0 + 0.1 * jax.random.normal(ks[7], (out_ch,), jnp.float32),
        "t2": 0.1 * jax.random.normal(ks[8], (out_ch,), jnp.float32),
    }

    y = polyencblock_forward(x, params)
    y = jax.block_until_ready(y)

    ref = _ref_forward(x, params)
    assert y.shape == (N, out_ch, H // 2, W // 2)
    assert jnp.allclose(y, ref, atol=1e-3, rtol=1e-3), float(
        jnp.max(jnp.abs(y - ref)))

    print("KERNEL_OK")
</pallas_src>

<mosaic_0001>
module attributes {stable_mosaic.version = 11 : i64} {
  func.func @_conv_gn_relu_kernel(%arg0: i32, %arg1: memref<1x144x64xf32, #tpu.memory_space<vmem>>, %arg2: memref<8x144xf32, #tpu.memory_space<vmem>>, %arg3: memref<8x8xf32, #tpu.memory_space<vmem>>, %arg4: memref<8x1xf32, #tpu.memory_space<vmem>>, %arg5: memref<8x1xf32, #tpu.memory_space<vmem>>, %arg6: memref<8x1xf32, #tpu.memory_space<vmem>>, %arg7: memref<1x8x64xf32, #tpu.memory_space<vmem>>) attributes {dimension_semantics = [#tpu.dimension_semantics<parallel>], iteration_bounds = array<i64: 2>, scalar_prefetch = 0 : i64, scratch_operands = 0 : i64, tpu.core_type = #tpu.core_type<tc>, window_params = [{transform_indices = @transform_0, window_bounds = array<i64: 1, 144, 64>}, {pipeline_mode = #tpu.pipeline_mode<synchronous>, transform_indices = @transform_1, window_bounds = array<i64: 8, 144>}, {pipeline_mode = #tpu.pipeline_mode<synchronous>, transform_indices = @transform_2, window_bounds = array<i64: 8, 8>}, {pipeline_mode = #tpu.pipeline_mode<synchronous>, transform_indices = @transform_3, window_bounds = array<i64: 8, 1>}, {pipeline_mode = #tpu.pipeline_mode<synchronous>, transform_indices = @transform_4, window_bounds = array<i64: 8, 1>}, {pipeline_mode = #tpu.pipeline_mode<synchronous>, transform_indices = @transform_5, window_bounds = array<i64: 8, 1>}, {transform_indices = @transform_6, window_bounds = array<i64: 1, 8, 64>}]} {
    %c0 = arith.constant 0 : index
    %c0_0 = arith.constant 0 : index
    %0 = vector.load %arg2[%c0, %c0_0] : memref<8x144xf32, #tpu.memory_space<vmem>>, vector<8x144xf32>
    %c0_1 = arith.constant 0 : index
    %c0_2 = arith.constant 0 : index
    %c0_3 = arith.constant 0 : index
    %1 = vector.load %arg1[%c0_1, %c0_2, %c0_3] : memref<1x144x64xf32, #tpu.memory_space<vmem>>, vector<1x144x64xf32>
    %2 = vector.shape_cast %1 : vector<1x144x64xf32> to vector<144x64xf32>
    %cst = arith.constant dense<0.000000e+00> : vector<8x64xf32>
    %3 = tpu.matmul %0, %2, %cst {dimension_numbers = #tpu.dot_dimension_numbers<[1], [0], [0], [1], [0, 0, 1, 1], [], []>} : vector<8x144xf32>, vector<144x64xf32>, vector<8x64xf32> -> vector<8x64xf32>
    %c0_4 = arith.constant 0 : index
    %c0_5 = arith.constant 0 : index
    %4 = vector.load %arg4[%c0_4, %c0_5] : memref<8x1xf32, #tpu.memory_space<vmem>>, vector<8x1xf32>
    %5 = vector.broadcast %4 : vector<8x1xf32> to vector<8x64xf32>
    %6 = arith.addf %3, %5 : vector<8x64xf32>
    %c0_6 = arith.constant 0 : index
    %c0_7 = arith.constant 0 : index
    %7 = vector.load %arg3[%c0_6, %c0_7] : memref<8x8xf32, #tpu.memory_space<vmem>>, vector<8x8xf32>
    %cst_8 = arith.constant dense<0.000000e+00> : vector<8x64xf32>
    %8 = tpu.matmul %7, %6, %cst_8 {dimension_numbers = #tpu.dot_dimension_numbers<[1], [0], [0], [1], [0, 0, 1, 1], [], []>} : vector<8x8xf32>, vector<8x64xf32>, vector<8x64xf32> -> vector<8x64xf32>
    %c0_9 = arith.constant 0 : index
    %c0_10 = arith.constant 0 : index
    %9 = vector.load %arg3[%c0_9, %c0_10] : memref<8x8xf32, #tpu.memory_space<vmem>>, vector<8x8xf32>
    %10 = arith.mulf %6, %6 : vector<8x64xf32>
    %cst_11 = arith.constant dense<0.000000e+00> : vector<8x64xf32>
    %11 = tpu.matmul %9, %10, %cst_11 {dimension_numbers = #tpu.dot_dimension_numbers<[1], [0], [0], [1], [0, 0, 1, 1], [], []>} : vector<8x8xf32>, vector<8x64xf32>, vector<8x64xf32> -> vector<8x64xf32>
    %cst_12 = arith.constant dense<0.000000e+00> : vector<8xf32>
    %12 = vector.multi_reduction <add>, %8, %cst_12 [1] : vector<8x64xf32> to vector<8xf32>
    %13 = vector.shape_cast %12 : vector<8xf32> to vector<8x1xf32>
    %cst_13 = arith.constant dense<0.000000e+00> : vector<8xf32>
    %14 = vector.multi_reduction <add>, %11, %cst_13 [1] : vector<8x64xf32> to vector<8xf32>
    %15 = vector.shape_cast %14 : vector<8xf32> to vector<8x1xf32>
    %16 = arith.mulf %13, %13 : vector<8x1xf32>
    %17 = arith.subf %15, %16 : vector<8x1xf32>
    %cst_14 = arith.constant 0.000000e+00 : f32
    %18 = vector.broadcast %cst_14 : f32 to vector<8x1xf32>
    %19 = arith.maximumf %17, %18 : vector<8x1xf32>
    %cst_15 = arith.constant 9.99999974E-6 : f32
    %20 = vector.broadcast %cst_15 : f32 to vector<8x1xf32>
    %21 = arith.addf %19, %20 : vector<8x1xf32>
    %22 = math.rsqrt %21 : vector<8x1xf32>
    %23 = vector.broadcast %13 : vector<8x1xf32> to vector<8x64xf32>
    %24 = arith.subf %6, %23 : vector<8x64xf32>
    %25 = vector.broadcast %22 : vector<8x1xf32> to vector<8x64xf32>
    %26 = arith.mulf %24, %25 : vector<8x64xf32>
    %c0_16 = arith.constant 0 : index
    %c0_17 = arith.constant 0 : index
    %27 = vector.load %arg5[%c0_16, %c0_17] : memref<8x1xf32, #tpu.memory_space<vmem>>, vector<8x1xf32>
    %28 = vector.broadcast %27 : vector<8x1xf32> to vector<8x64xf32>
    %29 = arith.mulf %26, %28 : vector<8x64xf32>
    %c0_18 = arith.constant 0 : index
    %c0_19 = arith.constant 0 : index
    %30 = vector.load %arg6[%c0_18, %c0_19] : memref<8x1xf32, #tpu.memory_space<vmem>>, vector<8x1xf32>
    %31 = vector.broadcast %30 : vector<8x1xf32> to vector<8x64xf32>
    %32 = arith.addf %29, %31 : vector<8x64xf32>
    %cst_20 = arith.constant 0.000000e+00 : f32
    %33 = vector.broadcast %cst_20 : f32 to vector<8x64xf32>
    %34 = arith.maximumf %32, %33 : vector<8x64xf32>
    %c0_21 = arith.constant 0 : index
    %c0_22 = arith.constant 0 : index
    %c0_23 = arith.constant 0 : index
    %35 = vector.load %arg7[%c0_21, %c0_22, %c0_23] : memref<1x8x64xf32, #tpu.memory_space<vmem>>, vector<1x8x64xf32>
    %36 = vector.shape_cast %35 : vector<1x8x64xf32> to vector<8x64xf32>
    %37 = vector.shape_cast %34 : vector<8x64xf32> to vector<1x8x64xf32>
    tpu.vector_store %arg7[%c0_21, %c0_22, %c0_23], %37 {strides = array<i32>} : memref<1x8x64xf32, #tpu.memory_space<vmem>>, vector<1x8x64xf32>,
    return
  }
  func.func @transform_0(%arg0: i32) -> (i32, i32, i32) {
    %c0_i32 = arith.constant 0 : i32
    %c0_i32_0 = arith.constant 0 : i32
    %c0_i32_1 = arith.constant 0 : i32
    return %arg0, %c0_i32, %c0_i32_0 : i32, i32, i32
  }
  func.func @transform_1(%arg0: i32) -> (i32, i32) {
    %c0_i32 = arith.constant 0 : i32
    %c0_i32_0 = arith.constant 0 : i32
    %c0_i32_1 = arith.constant 0 : i32
    return %c0_i32, %c0_i32_0 : i32, i32
  }
  func.func @transform_2(%arg0: i32) -> (i32, i32) {
    %c0_i32 = arith.constant 0 : i32
    %c0_i32_0 = arith.constant 0 : i32
    %c0_i32_1 = arith.constant 0 : i32
    return %c0_i32, %c0_i32_0 : i32, i32
  }
  func.func @transform_3(%arg0: i32) -> (i32, i32) {
    %c0_i32 = arith.constant 0 : i32
    %c0_i32_0 = arith.constant 0 : i32
    %c0_i32_1 = arith.constant 0 : i32
    return %c0_i32, %c0_i32_0 : i32, i32
  }
  func.func @transform_4(%arg0: i32) -> (i32, i32) {
    %c0_i32 = arith.constant 0 : i32
    %c0_i32_0 = arith.constant 0 : i32
    %c0_i32_1 = arith.constant 0 : i32
    return %c0_i32, %c0_i32_0 : i32, i32
  }
  func.func @transform_5(%arg0: i32) -> (i32, i32) {
    %c0_i32 = arith.constant 0 : i32
    %c0_i32_0 = arith.constant 0 : i32
    %c0_i32_1 = arith.constant 0 : i32
    return %c0_i32, %c0_i32_0 : i32, i32
  }
  func.func @transform_6(%arg0: i32) -> (i32, i32, i32) {
    %c0_i32 = arith.constant 0 : i32
    %c0_i32_0 = arith.constant 0 : i32
    %c0_i32_1 = arith.constant 0 : i32
    return %arg0, %c0_i32, %c0_i32_0 : i32, i32, i32
  }
}

</mosaic_0001>

<bundles_post_ra>
// kernel: tpu_custom_call.1
= control target key start
LH: loop header
LB: loop body
LE: loop exit
PB: predicated region body
PF: predicated region fallthrough
CT: control target
= control target key end

     0   :  { %11 = vsyncpa [#allocation3], 0  ;;  %s946_s0 = inlined_call_operand.vmem [shape: f32[2,144,64], index: 0, kind: input, shape index: {}]   ;;  %s947_s1 = inlined_call_operand.vmem [shape: f32[8,144], index: 1, kind: input, shape index: {}]   ;;  %s948_s2 = inlined_call_operand.vmem [shape: f32[8,8], index: 2, kind: input, shape index: {}]   ;;  %s949_s3 = inlined_call_operand.vmem [shape: f32[8,1], index: 3, kind: input, shape index: {}]   ;;  %s950_s4 = inlined_call_operand.vmem [shape: f32[8,1], index: 4, kind: input, shape index: {}]   ;;  %s951_s5 = inlined_call_operand.vmem [shape: f32[8,1], index: 5, kind: input, shape index: {}]   ;;  %s952_s6 = inlined_call_operand.hbm [shape: f32[2,8,64], index: 6, kind: output, shape index: {}]  }
   0x1   :  { %13 = vsyncpa [#allocation3 + $0x1], 0  ;;  %s805_s21 = smov 0   ;;  %s807_s22 = smov 0  }
   0x2   :  { %s809_s23 = smov 0   ;;  %s811_s24 = smov 0  }
   0x3 LB: > { %s826_s25 = sadd.s32 4294967295, %s763_s24   ;;  %s599_s26 = sadd.s32 4294967294, %s763_s24   ;;  %s763_s24 = sphi %s811_s24, %s958_s24   ;;  %s759_s23 = sphi %s809_s23, %s957_s23   ;;  %s755_s22 = sphi %s807_s22, %s956_s22   ;;  %s751_s21 = sphi %s805_s21, %s955_s21  }
   0x4   : > { %s830_s27 = sadd.s32 1, %s763_s24   ;;  %s157_s28 = sadd.s32 1, %s759_s23 }
   0x5   : > { %s154_s29 = ssub.s32 %s763_s24, %s830_s27  ;;  %p167_p0 = scmp.ne.s32.totalorder %s759_s23, %s755_s22 }
   0x6   : > { %p155_p1 = scmp.eq.s32.totalorder %s154_s29, 0  ;;  %p168_p2 = scmp.eq.s32.totalorder %s826_s25, 1 }
   0x7   : > { %p173_p3 = scmp.ne.s32.totalorder %s755_s22, %s751_s21  ;;  %p174_p4 = scmp.eq.s32.totalorder %s599_s26, 1 }
   0x8   : > { %s841_s30 = scalar_select %p155_p1, %s759_s23, %s157_s28  }
   0x9   : > { %p843_p5 = por %p168_p2, %p167_p0  ;;  %p847_p6 = por %p174_p4, %p173_p3 }
   0xa   : > { %p602_p7 = scmp.ge.s32.totalorder %s763_s24, 1  ;;  %p215_p8 = scmp.lt.s32.totalorder %s763_s24, 3 }
   0xc   : > { %p216_p9 = pnand %p602_p7, %p215_p8 }
   0xd   : > { %p245_p10 = scmp.lt.s32.totalorder (!%p216_p9), %s826_s25, 1  ;;  %v251_v0 = vld [vmem:[%s947_s1 + $0x8] sm:$0xff] (!%p216_p9)  ;;  %vm276_vm0 = vcmask (!%p216_p9), 130048   ;;  %v765_v1 = vmov (!%p216_p9), 0.0|0.0   ;;  %v270_v2 = vld [vmem:[%s949_s3] sm:$0xff] (!%p216_p9)  ;;  %v766_v3 = vmov (!%p216_p9), 0  }
   0xe   : > { %219 = sbr.rel (%p216_p9) target bundleno = 677 (0x2a5), region = 44  ;;  %626 = vmatprep.subr.bf16.mxu0 (!%p216_p9), %v765_v1  ;;  %605 = vmatprep.mubr.msk.f32.mxu0 (!%p216_p9), %vm276_vm0, %v251_v0  ;;  %v250_v31 = vld [vmem:[%s947_s1] sm:$0xff] (!%p216_p9)  ;;  %v767_v32 = vmov (!%p216_p9), 0.0   ;;  %vm768_vm1 = vmmov (!%p216_p9), 0   ;;  %vm351_vm2 = vcmask (!%p216_p9), 64512   ;;  %vm496_vm3 = vcmask (!%p216_p9), 523264  }
   0xf   : > { %697 = vset.pattern.permute.xlu0 (!%p216_p9), %v766_v3  ;;  %698 = vset.pattern.permute.xlu1 (!%p216_p9), %v766_v3  ;;  %v510_v33 = vld [vmem:[%s950_s4] sm:$0xff] (!%p216_p9)  ;;  %s242_s11 = sand.u32 (!%p216_p9), 1, %s755_s22  }
  0x10   : > { %273 = vperm.xlu0 (!%p216_p9), %697, %v270_v2   ;;  %616 = vmatprep.subr.mxu1 (!%p216_p9), %v767_v32  ;;  %v350_v38 = vld [vmem:[%s948_s2] sm:$0xff] (!%p216_p9)  ;;  %s603_s12 = sshll.u32 (!%p216_p9), %s242_s11, 3  ;;  %s527_s19 = scalar_lea.sflag (!%p216_p9), [#allocation3], %s242_s11 }
  0x11   : > { %618 = vmatprep.mubr.msk.f32.mxu1 (!%p216_p9), %vm768_vm1, %v767_v32  ;;  %513 = vperm.xlu1 (!%p216_p9), %698, %v510_v33   ;;  %v517_v46 = vld [vmem:[%s951_s5] sm:$0xff] (!%p216_p9) }
  0x15   : > { %s246_s13 = scalar_select %p245_p10, %s826_s25, 1 }
  0x17   : > { %s653_s14 = smul.u32 144, %s246_s13  ;;  %s609_s13 = sshll.u32 %s826_s25, 7 }
  0x18   : > { %s903_s18 = scalar_lea.hbm %s952_s6, %s609_s13  ;;  %s769_s25 = smov [#allocation2]  }
  0x19   : > { %s864_s17 = scalar_lea.vmem %s946_s0, %s653_s14  ;;  %s244_s14 = scalar_lea.vmem [#allocation2], %s603_s12 }
  0x1a   : > { %v252_v4 = vld [vmem:[%s864_s17] sm:$0xff]  ;;  %v253_v5 = vld [vmem:[%s864_s17 + $0x8] sm:$0xff]  ;;  %v254_v6 = vld [vmem:[%s864_s17 + $0x10] sm:$0xff]  ;;  %s540_s15 = sshll.u32 %s244_s14, 4  ;;  %s705_s26 = sshll.u32 %s769_s25, 4  ;;  %s905_s15 = int_to_ptr.vmem [resolvable:$true] %s540_s15  ;;  %s706_s26 = int_to_ptr.vmem [resolvable:$false] %s705_s26 }
  0x1b   : > { %v627_v7 = vpack.c.bf16 %v253_v5, %v252_v4  ;;  %v255_v8 = vld [vmem:[%s864_s17 + $0x18] sm:$0xff]  ;;  %v256_v10 = vld [vmem:[%s864_s17 + $0x20] sm:$0xff]  ;;  %v257_v11 = vld [vmem:[%s864_s17 + $0x28] sm:$0xff]  ;;  %s701_s20 = scalar_lea.vmem %s905_s15, 128  ;;  %s707_s28 = scalar_lea.vmem %s706_s26, 256 }
  0x1c   : > { %v630_v9 = vpack.c.bf16 %v255_v8, %v254_v6  ;;  %v633_v12 = vpack.c.bf16 %v257_v11, %v256_v10  ;;  %v258_v13 = vld [vmem:[%s864_s17 + $0x30] sm:$0xff]  ;;  %v259_v14 = vld [vmem:[%s864_s17 + $0x38] sm:$0xff]  ;;  %v260_v16 = vld [vmem:[%s864_s17 + $0x40] sm:$0xff]  ;;  %p702_p11 = scmp.ne.s32.totalorder %s905_s15, %s701_s20  ;;  %p708_p0 = scmp.lt.s32.totalorder %s905_s15, %s706_s26 }
  0x1d   : > { %628 = vmatpush1.bf16.msra.mxu0 %v627_v7  ;;  %v636_v15 = vpack.c.bf16 %v259_v14, %v258_v13  ;;  %v261_v17 = vld [vmem:[%s864_s17 + $0x48] sm:$0xff]  ;;  %v262_v19 = vld [vmem:[%s864_s17 + $0x50] sm:$0xff]  ;;  %v263_v20 = vld [vmem:[%s864_s17 + $0x58] sm:$0xff]  ;;  %p709_p1 = scmp.lt.s32.totalorder %s707_s28, %s701_s20 }
  0x1e   : > { %629 = vmatprep.subr.bf16.mxu0 %v765_v1  ;;  %v639_v18 = vpack.c.bf16 %v261_v17, %v260_v16  ;;  %v642_v21 = vpack.c.bf16 %v263_v20, %v262_v19  ;;  %v264_v22 = vld [vmem:[%s864_s17 + $0x60] sm:$0xff]  ;;  %v265_v23 = vld [vmem:[%s864_s17 + $0x68] sm:$0xff]  ;;  %v266_v25 = vld [vmem:[%s864_s17 + $0x70] sm:$0xff]  ;;  %p703_p12 = pnand %p702_p11, %p843_p5 }
  0x1f   : > { %v645_v24 = vpack.c.bf16 %v265_v23, %v264_v22  ;;  %v267_v26 = vld [vmem:[%s864_s17 + $0x78] sm:$0xff]  ;;  %v268_v28 = vld [vmem:[%s864_s17 + $0x80] sm:$0xff]  ;;  %v269_v29 = vld [vmem:[%s864_s17 + $0x88] sm:$0xff]  ;;  %p710_p2 = por %p709_p1, %p708_p0 }
  0x20   : > { %v648_v27 = vpack.c.bf16 %v267_v26, %v266_v25  ;;  %v651_v30 = vpack.c.bf16 %v269_v29, %v268_v28  ;;  %p704_p13 = pneg %p703_p12 }
  0x21   : > { %631 = vmatpush1.bf16.msra.mxu0 %v630_v9 }
  0x22   : > { %632 = vmatprep.subr.bf16.mxu0 %v765_v1  ;;  %p711_p3 = pnand %p710_p2, %p704_p13 }
  0x25   : > { %634 = vmatpush1.bf16.msra.mxu0 %v633_v12 }
  0x26   : > { %635 = vmatprep.subr.bf16.mxu0 %v765_v1 }
  0x29   : > { %637 = vmatpush1.bf16.msra.mxu0 %v636_v15 }
  0x2a   : > { %638 = vmatprep.subr.bf16.mxu0 %v765_v1 }
  0x2d   : > { %640 = vmatpush1.bf16.msra.mxu0 %v639_v18 }
  0x2e   : > { %641 = vmatprep.subr.bf16.mxu0 %v765_v1 }
  0x31   : > { %643 = vmatpush1.bf16.msra.mxu0 %v642_v21 }
  0x32   : > { %644 = vmatprep.subr.bf16.mxu0 %v765_v1 }
  0x35   : > { %646 = vmatpush1.bf16.msra.mxu0 %v645_v24 }
  0x36   : > { %647 = vmatprep.subr.bf16.mxu0 %v765_v1 }
  0x39   : > { %649 = vmatpush1.bf16.msra.mxu0 %v648_v27 }
  0x3a   : > { %650 = vmatprep.subr.bf16.mxu0 %v765_v1 }
  0x3d   : > { %652 = vmatpush1.bf16.msra.mxu0 %v651_v30 }
  0x40   : > { %345 = vmatmul.mubr.f32.vlgmr.msra.gmra.mrb[0].mxu0 %v250_v31 }
  0x8f   : > { %v274_v34 = vpop.permute.xlu0 %273 }
  0x90   : > { %v514_v47 = vpop.permute.xlu1 %513 }
 0x113   : > { %v346_v35 = vpop.f32.mrb[0].mxu0 }
 0x114   : > { %v347_v36 = vadd.f32 %v346_v35, %v274_v34  ;;  %v348_v37 = vpop.f32.mrb[1].mxu0 }
 0x116   : > { %v425_v39 = vmul.f32 %v347_v36, %v347_v36  ;;  %617 = vmatpush3.msra.mxu1 %v347_v36 }
 0x117   : > { %619 = vmatmul.mubr.msk.f32.vlgmr.msra.gmra.mrb[0].mxu1 %vm351_vm2, %v350_v38  ;;  %621 = vmatprep.subr.mxu1 %v767_v32 }
 0x118   : > { %622 = vmatpush3.msra.mxu1 %v425_v39  ;;  %623 = vmatprep.mubr.msk.f32.mxu1 %vm768_vm1, %v767_v32 }
 0x11b   : > { %624 = vmatmul.mubr.msk.f32.vlgmr.msra.gmra.mrb[2].mxu1 %vm351_vm2, %v350_v38 }
 0x1ea   : > { %v421_v40 = vpop.f32.mrb[0].mxu1 }
 0x1eb   : > { %v620_v41 = vpop.f32.mrb[1].mxu1  ;;  %v497_v42 = vsel %vm496_vm3, %v421_v40, 0.0 }
 0x1ec   : > { %498 = vadd.xlane.f32.xlu0 %v497_v42 }
 0x1ee   : > { %v492_v43 = vpop.f32.mrb[2].mxu1 }
 0x1ef   : > { %v625_v44 = vpop.f32.mrb[3].mxu1  ;;  %v500_v45 = vsel %vm496_vm3, %v492_v43, 0.0 }
 0x1f0   : > { %501 = vadd.xlane.f32.xlu1 %v500_v45 }
 0x201   : > { %520 = vperm.xlu1 %698, %v517_v46  }
 0x279   : > { %v499_v48 = vpop.xlane.xlu0 %498 }
 0x27a   : > { %v503_v49 = vmul.f32 %v499_v48, %v499_v48  ;;  %v508_v54 = vsub.f32 %v347_v36, %v499_v48 }
 0x27d   : > { %v502_v50 = vpop.xlane.xlu1 %501 }
 0x27e   : > { %v504_v51 = vsub.f32 %v502_v50, %v503_v49 }
 0x280   : > { %v505_v52 = vmax.f32 %v504_v51, 0.0 }
 0x281   : > { %v521_v58 = vpop.permute.xlu1 %520 }
 0x282   : > { %v506_v53 = vadd.f32 1e-05, %v505_v52 }
 0x284   : > { %699 = vrsqrt.f32 %v506_v53 }
 0x28e   : > { %v700_v55 = vpop.eup %699 }
 0x28f   : > { %v509_v56 = vmul.f32 %v700_v55, %v508_v54 }
 0x291   : > { %v516_v57 = vmul.f32 %v514_v47, %v509_v56 }
 0x293   : > { %v523_v59 = vadd.f32 %v521_v58, %v516_v57 }
 0x295   : > { %v524_v60 = vmax.f32 %v523_v59, 0.0 }
 0x297   : > { %525 = vst.msk [vmem:[%s244_s14] sm:$0xff] %vm496_vm3, %v524_v60 }
 0x298   : > { %714 = shalt.err (!%p711_p3)
}
 0x299   : > { %s715_s29 = scalar_lea.hbm %s903_s18, 128  ;;  %s719_s11 = scalar_lea.hbm %s952_s6, 256 }
 0x29a   : > { %p716_p4 = scmp.ne.s32.totalorder %s903_s18, %s715_s29  ;;  %p720_p9 = scmp.lt.u32.totalorder %s903_s18, %s952_s6 }
 0x29b   : > { %p721_p10 = scmp.lt.u32.totalorder %s719_s11, %s715_s29  ;;  %p723_p12 = scmp.lt.u32.totalorder %s715_s29, %s903_s18 }
 0x29c   : > { %p717_p7 = pnand %p716_p4, %p843_p5 }
 0x29d   : > { %p722_p11 = por %p721_p10, %p720_p9 }
 0x29e   : > { %p718_p8 = pneg %p717_p7 }
 0x29f   : > { %p724_p13 = por %p723_p12, %p722_p11 }
 0x2a1   : > { %p725_p0 = pnand %p724_p13, %p718_p8 }
 0x2a3   : > { %728 = shalt.err (!%p725_p0)
}
 0x2a4   : > { %654 = dma.vmem_to_hbm [thread:$0]  (%p843_p5), %s905_s15, 128, %s903_s18, %s527_s19  }
 0x2a5 PF: > { %p660_p1 = scmp.ge.s32.totalorder %s763_s24, 2  ;;  %s552_s14 = sand.u32 1, %s751_s21  }
 0x2a6   : > { %s553_s16 = scalar_lea.sflag [#allocation3], %s552_s14 }
 0x2a7   : > { %p657_p2 = pnand %p660_p1, %p847_p6 }
 0x2a9   : > { %746 = dma.done.wait (!%p657_p2), %s553_s16, 128  }
 0x2aa   : > { %748 = vsyncadd (!%p657_p2), %s553_s16, 4294967168  ;;  %p16_p3 = scmp.ge.s32.totalorder %s830_s27, 4   ;;  %s955_s21 = smov %s755_s22 }
 0x2ab   : > { %s956_s22 = smov %s759_s23  ;;  %s957_s23 = smov %s841_s30 }
 0x2ac   : > { %s958_s24 = smov %s830_s27  ;;  %18 = sbr.rel (!%p16_p3) target bundleno = 3 (0x3), region = 79 }
 0x2b3   :  { %558 = vsyncpa [#allocation3], 1 }
 0x2b4   :  { %560 = vsyncpa [#allocation3 + $0x1], 1 }

</bundles_post_ra>
